<compile_context>
chip_gen: v7x
topology: tpu7x:2x2x1
jax: 0.10.0
libtpu: 0.0.40
codegen_flags: <defaults>
</compile_context>

<pallas_src>
import functools
import re

import jax
import jax.numpy as jnp
from jax.experimental import pallas as pl
from jax.experimental.pallas import tpu as pltpu


def _round_up(x, m):
    return ((x + m - 1) // m) * m


def _tpu_generation_and_vmem():
    """Best-effort TPU generation + per-core VMEM capacity (bytes)."""
    gen = 6
    try:
        kind = jax.devices()[0].device_kind  # e.g. "TPU v5 lite", "TPU v6e", "TPU7x"
        m = re.search(r"(\d+)", kind)
        if m:
            gen = int(m.group(1))
    except Exception:
        pass
    vmem_cap = 64 * 2**20 if gen >= 7 else 128 * 2**20
    try:
        cap = getattr(pltpu.get_tpu_info(), "vmem_capacity_bytes", None)
        if cap:
            vmem_cap = int(cap)
    except Exception:
        pass
    return gen, vmem_cap


def _tile_vmem_bytes(tm, tf, h, itemsize, has_bias):
    """Rough VMEM footprint of one grid step (2-deep BlockSpec pipelining)."""
    w_stream = 2 * (2 * h * tf + tf * h) * itemsize        # w_gate + w_up + w2 tiles
    x_stream = 2 * tm * h * itemsize
    o_stream = 2 * tm * h * itemsize
    b_stream = (2 * (2 * tf + h) * itemsize) if has_bias else 0
    acc = tm * h * 4                                       # f32 accumulator scratch
    temps = 3 * tm * tf * 4                                # gate / up / act temporaries
    return w_stream + x_stream + o_stream + b_stream + acc + temps


def _choose_tm(t, gen, itemsize):
    # v6e needs ~650 flops/byte to reach the MXU roofline (all weights are
    # re-streamed per token tile) -> bigger token tile.  v5e (~240) and v7x
    # (~310) are already compute-bound at 256, and v7x only has 64 MiB VMEM.
    target = 512 if gen == 6 else 256
    mult = 32 if itemsize == 1 else 16        # sublane packing (bf16=16, int8/fp8=32)
    if t >= 2 * target:
        return target
    if gen >= 7 and t > mult:
        # v7x has 2 TensorCores: keep >= 2 token tiles so both get work.
        return min(target, _round_up(-(-t // 2), mult))
    return min(target, _round_up(max(t, 1), mult))


def _choose_tf(f, h, tm, itemsize, has_bias, budget):
    # TF is the K dim of matmul-2; prefer 256-multiples (256-deep MXU on
    # v6e/v7x), largest that fits the per-generation VMEM budget.
    for cand in (1024, 512, 256, 128):
        if f % cand:
            continue
        if _tile_vmem_bytes(tm, cand, h, itemsize, has_bias) <= budget:
            return cand
    if f % 128 == 0:
        return 128
    return None  # F not a multiple of 128 -> padded split path in the wrapper


def _mlp_kernel(*refs, has_bias, single_k, cmlp, act_dtype, bf16_act):
    if has_bias:
        x_ref, wg_ref, bg_ref, wu_ref, bu_ref, w2_ref, b2_ref = refs[:7]
        rest = refs[7:]
    else:
        x_ref, wg_ref, wu_ref, w2_ref = refs[:4]
        b2_ref = None
        rest = refs[4:]
    o_ref = rest[0]
    acc_ref = None if single_k else rest[1]

    x = x_ref[...]  # native dtype straight onto the MXU (bf16 fast path)
    gate = jnp.dot(x, wg_ref[...], preferred_element_type=jnp.float32)
    up = jnp.dot(x, wu_ref[...], preferred_element_type=jnp.float32)
    if has_bias:
        gate = gate + bg_ref[...].astype(jnp.float32)
        up = up + bu_ref[...].astype(jnp.float32)

    # SwiGLU: sigmoid on the EUP, multiplies on the VPU.
    silu_g = gate * jax.nn.sigmoid(gate)
    if bf16_act:
        # v6e/v7x have bf16 VALU; last multiply in the MXU feed dtype halves
        # the (TM, TF) temporary footprint.
        act = silu_g.astype(jnp.bfloat16) * up.astype(jnp.bfloat16)
    else:
        act = (silu_g * up).astype(act_dtype)

    partial = jnp.dot(act, w2_ref[...], preferred_element_type=jnp.float32)

    def _finalize(val):
        if has_bias:
            val = val + b2_ref[...].astype(jnp.float32)
        o_ref[...] = (val * cmlp).astype(o_ref.dtype)

    if single_k:
        _finalize(partial)
    else:
        k = pl.program_id(1)

        @pl.when(k == 0)
        def _():
            acc_ref[...] = jnp.zeros_like(acc_ref)

        acc_ref[...] += partial

        @pl.when(k == pl.num_programs(1) - 1)
        def _():
            _finalize(acc_ref[...])


def mlp_pallas(hidden_states, w1, w2, cmlp, b1=None, b2=None, *, tm=None, tf=None):
    """hidden_states: [S, B, H]; w1: [H, 2F]; w2: [F, H]; b1: [2F]|None; b2: [H]|None."""
    s, b, h = hidden_states.shape
    t = s * b
    two_f = w1.shape[1]
    f = w2.shape[0]
    assert two_f == 2 * f
    has_bias = b1 is not None
    if has_bias:
        assert b2 is not None

    x = hidden_states.reshape(t, h)
    in_dtype = hidden_states.dtype
    itemsize = jnp.dtype(in_dtype).itemsize

    gen, vmem_cap = _tpu_generation_and_vmem()
    budget = (vmem_cap * 3) // 4  # ~48 MiB on v7x, ~96 MiB on v5e/v6e

    if tm is None:
        tm = _choose_tm(t, gen, itemsize)
    t_pad = _round_up(t, tm)
    if t_pad != t:
        # TODO(synk): handle the ragged last token tile with a masked store
        # instead of a full-activation pad copy.
        x = jnp.pad(x, ((0, t_pad - t), (0, 0)))

    if tf is None:
        tf = _choose_tf(f, h, tm, itemsize, has_bias, budget)

    gate_b = up_b = b2_2d = None
    if tf is not None and f % tf == 0:
        # Fused-weight path: feed w1 (and b1) twice with column-offset
        # BlockSpecs -- no wrapper-side slice copies, no extra HBM traffic.
        f_eff = f
        nb = f // tf
        gate_w, up_w = w1, w1
        w2_in = w2
        gate_w_map = lambda i, k: (0, k)
        up_w_map = lambda i, k: (0, nb + k)
        if has_bias:
            b1_2d = b1.reshape(1, two_f)
            gate_b, up_b = b1_2d, b1_2d
            gate_b_map = lambda i, k: (0, k)
            up_b_map = lambda i, k: (0, nb + k)
            b2_2d = b2.reshape(1, h)
    else:
        # Rare path: F not a multiple of 128 (or nothing fits).  Split the
        # fused projection and zero-pad F to a 256-multiple: zero columns give
        # zero activations hitting zero W2 rows, so the result is exact.
        tf = 256 if tf is None else tf
        f_eff = _round_up(f, tf)
        pad_f = f_eff - f
        gate_w = jnp.pad(w1[:, :f], ((0, 0), (0, pad_f)))
        up_w = jnp.pad(w1[:, f:], ((0, 0), (0, pad_f)))
        w2_in = jnp.pad(w2, ((0, pad_f), (0, 0)))
        gate_w_map = lambda i, k: (0, k)
        up_w_map = lambda i, k: (0, k)
        if has_bias:
            gate_b = jnp.pad(b1[:f], (0, pad_f)).reshape(1, f_eff)
            up_b = jnp.pad(b1[f:], (0, pad_f)).reshape(1, f_eff)
            gate_b_map = lambda i, k: (0, k)
            up_b_map = lambda i, k: (0, k)
            b2_2d = b2.reshape(1, h)

    grid = (t_pad // tm, f_eff // tf)
    single_k = grid[1] == 1
    bf16_act = (jnp.dtype(w2_in.dtype) == jnp.bfloat16) and gen >= 6

    kernel = functools.partial(
        _mlp_kernel,
        has_bias=has_bias,
        single_k=single_k,
        cmlp=float(cmlp),
        act_dtype=jnp.dtype(w2_in.dtype),
        bf16_act=bf16_act,
    )

    in_specs = [pl.BlockSpec((tm, h), lambda i, k: (i, 0))]  # x (resident over k)
    inputs = [x]
    in_specs.append(pl.BlockSpec((h, tf), gate_w_map)); inputs.append(gate_w)
    if has_bias:
        in_specs.append(pl.BlockSpec((1, tf), gate_b_map)); inputs.append(gate_b)
    in_specs.append(pl.BlockSpec((h, tf), up_w_map)); inputs.append(up_w)
    if has_bias:
        in_specs.append(pl.BlockSpec((1, tf), up_b_map)); inputs.append(up_b)
    in_specs.append(pl.BlockSpec((tf, h), lambda i, k: (k, 0))); inputs.append(w2_in)
    if has_bias:
        in_specs.append(pl.BlockSpec((1, h), lambda i, k: (0, 0))); inputs.append(b2_2d)

    scratch_shapes = [] if single_k else [pltpu.VMEM((tm, h), jnp.float32)]

    est = _tile_vmem_bytes(tm, tf, h, itemsize, has_bias)
    vmem_limit = int(min(vmem_cap - (8 << 20), max(32 << 20, int(est * 1.25))))

    out = pl.pallas_call(
        kernel,
        out_shape=jax.ShapeDtypeStruct((t_pad, h), in_dtype),
        grid_spec=pltpu.PrefetchScalarGridSpec(
            num_scalar_prefetch=0,
            grid=grid,
            in_specs=in_specs,
            out_specs=pl.BlockSpec((tm, h), lambda i, k: (i, 0)),
            scratch_shapes=scratch_shapes,
        ),
        compiler_params=pltpu.CompilerParams(
            dimension_semantics=("parallel", "arbitrary"),
            vmem_limit_bytes=vmem_limit,
        ),
    )(*inputs)

    return out[:t].reshape(s, b, h)


def mlp_reference(x2d, w1, w2, cmlp, b1=None, b2=None):
    """Mixed-precision reference matching the kernel's dtype path."""
    f = w2.shape[0]
    gate = jnp.dot(x2d, w1[:, :f], preferred_element_type=jnp.float32)
    up = jnp.dot(x2d, w1[:, f:], preferred_element_type=jnp.float32)
    if b1 is not None:
        gate = gate + b1[:f].astype(jnp.float32)
        up = up + b1[f:].astype(jnp.float32)
    act = (jax.nn.silu(gate) * up).astype(w2.dtype)
    out = jnp.dot(act, w2, preferred_element_type=jnp.float32)
    if b2 is not None:
        out = out + b2.astype(jnp.float32)
    return out * cmlp


if __name__ == "__main__":
    # Small config consistent with the module: hidden_size=128,
    # ffn_hidden_size=256, seq=8, batch=2, cmlp=0.5.
    seq, batch, hidden, ffn = 8, 2, 128, 256
    cmlp = 0.5

    key = jax.random.PRNGKey(0)
    kx, kw1, kw2, kb1, kb2 = jax.random.split(key, 5)

    # nn.Linear stores weight as (out, in); the kernel consumes (in, out) = W.T.
    w1_f32 = (jax.random.normal(kw1, (2 * ffn, hidden), dtype=jnp.float32) * 0.05).T
    w2_f32 = (jax.random.normal(kw2, (hidden, ffn), dtype=jnp.float32) * 0.05).T
    b1_f32 = jax.random.normal(kb1, (2 * ffn,), dtype=jnp.float32) * 0.01
    b2_f32 = jax.random.normal(kb2, (hidden,), dtype=jnp.float32) * 0.01
    x_f32 = jax.random.normal(kx, (seq, batch, hidden), dtype=jnp.float32)

    # (dtype, add_bias, tf, atol, rtol): exercise the multi-step FFN reduction
    # with the f32 accumulator (tf=128), the single-step direct-store path
    # (tf=None -> 256), both bias variants, and both f32 / bf16 MXU paths.
    cases = [
        (jnp.float32, False, 128, 1e-2, 1e-2),
        (jnp.float32, True, None, 1e-2, 1e-2),
        (jnp.bfloat16, False, None, 5e-2, 5e-2),
        (jnp.bfloat16, True, 128, 5e-2, 5e-2),
    ]

    ok = True
    for dtype, add_bias, tf, atol, rtol in cases:
        x = x_f32.astype(dtype)
        w1 = w1_f32.astype(dtype)
        w2 = w2_f32.astype(dtype)
        b1 = b1_f32.astype(dtype) if add_bias else None
        b2 = b2_f32.astype(dtype) if add_bias else None

        out = mlp_pallas(x, w1, w2, cmlp, b1, b2, tf=tf)
        out = jax.block_until_ready(out)

        ref = mlp_reference(x.reshape(-1, hidden), w1, w2, cmlp, b1, b2)
        ref = ref.reshape(seq, batch, hidden)
        ok = ok and bool(
            jnp.allclose(out.astype(jnp.float32), ref, atol=atol, rtol=rtol)
        )

    assert ok, "mismatch vs reference"
    print("KERNEL_OK")
</pallas_src>

<mosaic_0001>
module attributes {stable_mosaic.version = 11 : i64} {
  func.func @_mlp_kernel(%arg0: i32, %arg1: i32, %arg2: memref<16x128xf32, #tpu.memory_space<vmem>>, %arg3: memref<128x128xf32, #tpu.memory_space<vmem>>, %arg4: memref<128x128xf32, #tpu.memory_space<vmem>>, %arg5: memref<128x128xf32, #tpu.memory_space<vmem>>, %arg6: memref<16x128xf32, #tpu.memory_space<vmem>>, %arg7: memref<16x128xf32, #tpu.memory_space<vmem>>) attributes {dimension_semantics = [#tpu.dimension_semantics<parallel>, #tpu.dimension_semantics<arbitrary>], iteration_bounds = array<i64: 1, 2>, scalar_prefetch = 0 : i64, scratch_operands = 1 : i64, tpu.core_type = #tpu.core_type<tc>, window_params = [{transform_indices = @transform_0, window_bounds = array<i64: 16, 128>}, {transform_indices = @transform_1, window_bounds = array<i64: 128, 128>}, {transform_indices = @transform_2, window_bounds = array<i64: 128, 128>}, {transform_indices = @transform_3, window_bounds = array<i64: 128, 128>}, {transform_indices = @transform_4, window_bounds = array<i64: 16, 128>}]} {
    %c0 = arith.constant 0 : index
    %c0_0 = arith.constant 0 : index
    %0 = vector.load %arg2[%c0, %c0_0] : memref<16x128xf32, #tpu.memory_space<vmem>>, vector<16x128xf32>
    %c0_1 = arith.constant 0 : index
    %c0_2 = arith.constant 0 : index
    %1 = vector.load %arg3[%c0_1, %c0_2] : memref<128x128xf32, #tpu.memory_space<vmem>>, vector<128x128xf32>
    %cst = arith.constant dense<0.000000e+00> : vector<16x128xf32>
    %2 = tpu.matmul %0, %1, %cst {dimension_numbers = #tpu.dot_dimension_numbers<[1], [0], [0], [1], [0, 0, 1, 1], [], []>} : vector<16x128xf32>, vector<128x128xf32>, vector<16x128xf32> -> vector<16x128xf32>
    %c0_3 = arith.constant 0 : index
    %c0_4 = arith.constant 0 : index
    %3 = vector.load %arg4[%c0_3, %c0_4] : memref<128x128xf32, #tpu.memory_space<vmem>>, vector<128x128xf32>
    %cst_5 = arith.constant dense<0.000000e+00> : vector<16x128xf32>
    %4 = tpu.matmul %0, %3, %cst_5 {dimension_numbers = #tpu.dot_dimension_numbers<[1], [0], [0], [1], [0, 0, 1, 1], [], []>} : vector<16x128xf32>, vector<128x128xf32>, vector<16x128xf32> -> vector<16x128xf32>
    %5 = arith.negf %2 : vector<16x128xf32>
    %6 = math.exp %5 : vector<16x128xf32>
    %cst_6 = arith.constant 1.000000e+00 : f32
    %7 = vector.broadcast %cst_6 : f32 to vector<16x128xf32>
    %8 = arith.addf %7, %6 : vector<16x128xf32>
    %9 = arith.divf %7, %8 : vector<16x128xf32>
    %10 = arith.mulf %2, %9 : vector<16x128xf32>
    %11 = arith.mulf %10, %4 : vector<16x128xf32>
    %c0_7 = arith.constant 0 : index
    %c0_8 = arith.constant 0 : index
    %12 = vector.load %arg5[%c0_7, %c0_8] : memref<128x128xf32, #tpu.memory_space<vmem>>, vector<128x128xf32>
    %cst_9 = arith.constant dense<0.000000e+00> : vector<16x128xf32>
    %13 = tpu.matmul %11, %12, %cst_9 {dimension_numbers = #tpu.dot_dimension_numbers<[1], [0], [0], [1], [0, 0, 1, 1], [], []>} : vector<16x128xf32>, vector<128x128xf32>, vector<16x128xf32> -> vector<16x128xf32>
    %c0_i32 = arith.constant 0 : i32
    %14 = arith.cmpi eq, %arg1, %c0_i32 : i32
    %15 = arith.extui %14 : i1 to i32
    %c0_i32_10 = arith.constant 0 : i32
    %16 = arith.cmpi ne, %15, %c0_i32_10 : i32
    scf.if %16 {
      %cst_16 = arith.constant 0.000000e+00 : f32
      %23 = vector.broadcast %cst_16 : f32 to vector<16x128xf32>
      %c0_17 = arith.constant 0 : index
      %c0_18 = arith.constant 0 : index
      %24 = vector.load %arg7[%c0_17, %c0_18] : memref<16x128xf32, #tpu.memory_space<vmem>>, vector<16x128xf32>
      tpu.vector_store %arg7[%c0_17, %c0_18], %23 {strides = array<i32>} : memref<16x128xf32, #tpu.memory_space<vmem>>, vector<16x128xf32>,
    } else {
    }
    %c0_11 = arith.constant 0 : index
    %c0_12 = arith.constant 0 : index
    %17 = vector.load %arg7[%c0_11, %c0_12] : memref<16x128xf32, #tpu.memory_space<vmem>>, vector<16x128xf32>
    %18 = arith.addf %17, %13 : vector<16x128xf32>
    %c0_13 = arith.constant 0 : index
    %c0_14 = arith.constant 0 : index
    %19 = vector.load %arg7[%c0_13, %c0_14] : memref<16x128xf32, #tpu.memory_space<vmem>>, vector<16x128xf32>
    tpu.vector_store %arg7[%c0_13, %c0_14], %18 {strides = array<i32>} : memref<16x128xf32, #tpu.memory_space<vmem>>, vector<16x128xf32>,
    %c1_i32 = arith.constant 1 : i32
    %20 = arith.cmpi eq, %arg1, %c1_i32 : i32
    %21 = arith.extui %20 : i1 to i32
    %c0_i32_15 = arith.constant 0 : i32
    %22 = arith.cmpi ne, %21, %c0_i32_15 : i32
    scf.if %22 {
      %c0_16 = arith.constant 0 : index
      %c0_17 = arith.constant 0 : index
      %23 = vector.load %arg7[%c0_16, %c0_17] : memref<16x128xf32, #tpu.memory_space<vmem>>, vector<16x128xf32>
      %cst_18 = arith.constant 5.000000e-01 : f32
      %24 = vector.broadcast %cst_18 : f32 to vector<16x128xf32>
      %25 = arith.mulf %23, %24 : vector<16x128xf32>
      %c0_19 = arith.constant 0 : index
      %c0_20 = arith.constant 0 : index
      %26 = vector.load %arg6[%c0_19, %c0_20] : memref<16x128xf32, #tpu.memory_space<vmem>>, vector<16x128xf32>
      tpu.vector_store %arg6[%c0_19, %c0_20], %25 {strides = array<i32>} : memref<16x128xf32, #tpu.memory_space<vmem>>, vector<16x128xf32>,
    } else {
    }
    return
  }
  func.func @transform_0(%arg0: i32, %arg1: i32) -> (i32, i32) {
    %c0_i32 = arith.constant 0 : i32
    %c0_i32_0 = arith.constant 0 : i32
    return %arg0, %c0_i32 : i32, i32
  }
  func.func @transform_1(%arg0: i32, %arg1: i32) -> (i32, i32) {
    %c0_i32 = arith.constant 0 : i32
    %c0_i32_0 = arith.constant 0 : i32
    return %c0_i32, %arg1 : i32, i32
  }
  func.func @transform_2(%arg0: i32, %arg1: i32) -> (i32, i32) {
    %c2_i32 = arith.constant 2 : i32
    %0 = arith.addi %c2_i32, %arg1 : i32
    %c0_i32 = arith.constant 0 : i32
    %c0_i32_0 = arith.constant 0 : i32
    return %c0_i32, %0 : i32, i32
  }
  func.func @transform_3(%arg0: i32, %arg1: i32) -> (i32, i32) {
    %c0_i32 = arith.constant 0 : i32
    %c0_i32_0 = arith.constant 0 : i32
    return %arg1, %c0_i32 : i32, i32
  }
  func.func @transform_4(%arg0: i32, %arg1: i32) -> (i32, i32) {
    %c0_i32 = arith.constant 0 : i32
    %c0_i32_0 = arith.constant 0 : i32
    return %arg0, %c0_i32 : i32, i32
  }
}

</mosaic_0001>

<bundles_post_ra>
// kernel: tpu_custom_call.1
= control target key start
LH: loop header
LB: loop body
LE: loop exit
PB: predicated region body
PF: predicated region fallthrough
CT: control target
= control target key end

     0   :  { %s1843_s0 = inlined_call_operand.hbm [shape: f32[16,128], index: 0, kind: input, shape index: {}]   ;;  %s1844_s1 = inlined_call_operand.hbm [shape: f32[128,512], index: 1, kind: input, shape index: {}]   ;;  %s1845_s2 = inlined_call_operand.hbm [shape: f32[128,512], index: 2, kind: input, shape index: {}]   ;;  %s1846_s3 = inlined_call_operand.hbm [shape: f32[256,128], index: 3, kind: input, shape index: {}]   ;;  %s1847_s4 = inlined_call_operand.hbm [shape: f32[16,128], index: 4, kind: output, shape index: {}]  }
   0x1   :  { %1868 = sst [smem:[#allocation22_spill]] %s1844_s1 }
   0x2   :  { %1869 = sst [smem:[#allocation23_spill]] %s1847_s4 }
   0x3   :  { %9 = vsyncpa [#allocation4], 0 }
   0x4   :  { %10 = vsyncpa [#allocation7], 0 }
   0x5   :  { %12 = vsyncpa [#allocation7 + $0x1], 0 }
   0x6   :  { %13 = vsyncpa [#allocation10], 0 }
   0x7   :  { %15 = vsyncpa [#allocation10 + $0x1], 0 }
   0x8   :  { %16 = vsyncpa [#allocation5], 0  ;;  %s1444_s15 = smov 0   ;;  %s1446_s16 = smov 0  }
   0x9   :  { %s1448_s17 = smov 0   ;;  %s1450_s18 = smov 0  }
   0xa   :  { %s1452_s19 = smov 0   ;;  %s1454_s20 = smov 0  }
   0xb   :  { %s1456_s21 = smov 0   ;;  %s1458_s22 = smov 0  }
   0xc   :  { %s1460_s23 = smov 0  }
   0xd LB: > { %1870 = sst [smem:[#allocation17_spill]] %s1382_s17  ;;  %s31_s24 = sadd.s32 1, %s1402_s22  ;;  %s1406_s23 = sphi %s1460_s23, %s22_s23   ;;  %s1402_s22 = sphi %s1458_s22, %s1910_s22   ;;  %s1398_s21 = sphi %s1456_s21, %s1909_s21   ;;  %s1394_s20 = sphi %s1454_s20, %s1908_s20   ;;  %s1390_s19 = sphi %s1452_s19, %s1907_s19   ;;  %s1386_s18 = sphi %s1450_s18, %s1906_s18   ;;  %s1382_s17 = sphi %s1448_s17, %s1901_s17   ;;  %s1378_s16 = sphi %s1446_s16, %s1905_s16   ;;  %s1374_s15 = sphi %s1444_s15, %s1904_s15  }
   0xe   : > { %1871 = sst [smem:[#allocation18_spill]] %s1406_s23  ;;  %s67_s25 = sadd.s32 1, %s1394_s20 }
   0xf   : > { %p32_p0 = scmp.ge.s32.totalorder %s31_s24, 2  ;;  %p74_p1 = scmp.ne.s32.totalorder %s1394_s20, %s1390_s19 }
  0x10   : > { %p1850_p2 = scmp.eq.s32.totalorder %s1406_s23, 0  ;;  %s90_s26 = sadd.s32 2, %s1402_s22 }
  0x11   : > { %s1912_s24 = smov (%p32_p0, %s31_s24), 0  ;;  %p1849_p6 = scmp.lt.s32.totalorder %s1406_s23, 2 }
  0x12   : > { %1872 = sst [smem:[#allocation19_spill]] %s1912_s24  ;;  %p1499_p3 = por %p1850_p2, %p74_p1 }
  0x13   : > { %s64_s28 = ssub.s32 %s1402_s22, %s1912_s24  ;;  %s91_s29 = sadd.s32 2, %s1912_s24 }
  0x14   : > { %p65_p4 = scmp.eq.s32.totalorder %s64_s28, 0  ;;  %s1506_s30 = ssub.s32 %s90_s26, %s91_s29 }
  0x15   : > { %p93_p5 = scmp.eq.s32.totalorder %s1506_s30, 0  ;;  %s200_s6 = sand.u32 1, %s1406_s23  }
  0x16   : > { %s1510_s5 = scalar_select %p65_p4, %s1394_s20, %s67_s25  }
  0x17   : > { %s1848_s7 = sand.u32 1, %s1394_s20   ;;  %s775_s9 = sshll.u32 %s1402_s22, 7 }
  0x18   : > { %1874 = sst [smem:[#allocation20_spill]] %s1510_s5  ;;  %s1517_s8 = sshll.u32 %s1848_s7, 7 }
  0x19   : > { %s1875_s1 = sld [smem:[#allocation22_spill]]  ;;  %s204_s13 = scalar_lea.vmem [#allocation6], %s1517_s8 }
  0x1a   : > { %s210_s14 = sshll.u32 %s204_s13, 4  ;;  %p1532_p7 = pnand %p1849_p6, %p1499_p3  ;;  %s1526_s14 = int_to_ptr.vmem [resolvable:$true] %s210_s14 }
  0x1b   : > { %s1539_s29 = scalar_lea.hbm %s1845_s2, %s775_s9  ;;  %s1544_s11 = scalar_lea.sflag [#allocation7], %s200_s6 }
  0x1c   : > { %s1876_s25 = scalar_select %p1532_p7, 1, 0 }
  0x1d   : > { %s1542_s10 = scalar_lea.hbm %s1539_s29, 256  ;;  %p1861_p9 = pneg %p1532_p7 }
  0x1f   : > { %s1523_s12 = scalar_lea.hbm %s1875_s1, %s775_s9  ;;  %s1176_s26 = scalar_lea.hbm %s1875_s1, 8192 }
  0x20   : > { %s1171_s13 = scalar_lea.hbm %s1523_s12, 2048  ;;  %p1177_p12 = scmp.lt.u32.totalorder %s1523_s12, %s1875_s1 }
  0x21   : > { %p1172_p8 = scmp.ne.s32.totalorder %s1523_s12, %s1171_s13  ;;  %p1178_p13 = scmp.lt.u32.totalorder %s1176_s26, %s1171_s13 }
  0x22   : > { %p1180_p1 = scmp.lt.u32.totalorder %s1171_s13, %s1523_s12 }
  0x23   : > { %p1174_p10 = pnand %p1861_p9, %p1172_p8  ;;  %p1179_p0 = por %p1178_p13, %p1177_p12 }
  0x25   : > { %p1175_p11 = pneg %p1174_p10  ;;  %p1181_p3 = por %p1180_p1, %p1179_p0 }
  0x27   : > { %p1182_p4 = pnand %p1181_p3, %p1175_p11 }
  0x29   : > { %1185 = shalt.err (!%p1182_p4)
}
  0x2a   : > { %s1186_s6 = scalar_lea.vmem %s1526_s14, 2048  ;;  %s1408_s7 = smov [#allocation6]  }
  0x2b   : > { %p1187_p8 = scmp.ne.s32.totalorder %s1526_s14, %s1186_s6  ;;  %s1191_s27 = sshll.u32 %s1408_s7, 4  ;;  %s1192_s27 = int_to_ptr.vmem [resolvable:$false] %s1191_s27 }
  0x2c   : > { %s1193_s28 = scalar_lea.vmem %s1192_s27, 4096  ;;  %p1194_p2 = scmp.lt.s32.totalorder %s1526_s14, %s1192_s27 }
  0x2d   : > { %p1189_p10 = pnand %p1187_p8, %p1861_p9  ;;  %p1195_p12 = scmp.lt.s32.totalorder %s1193_s28, %s1186_s6 }
  0x2f   : > { %p1190_p6 = pneg %p1189_p10  ;;  %p1196_p13 = por %p1195_p12, %p1194_p2 }
  0x31   : > { %p1197_p0 = pnand %p1196_p13, %p1190_p6 }
  0x33   : > { %1200 = shalt.err (!%p1197_p0)
}
  0x34   : > { %s1851_s13 = smov 512   ;;  %s1852_s26 = smov 128  }
  0x35   : > { %s1854_s9 = smov 8   ;;  %s1576_s6 = sadd.s32 4294967295, %s1406_s23  }
  0x36   : > { %1071 = dma.hbm_to_vmem [thread:$0]  (!%p1532_p7), %s1523_s12, 2048, %s1526_s14, %s1544_s11, %s1851_s13, %s1852_s26, %s1854_s9  }
  0x37   : > { %p80_p2 = scmp.ne.s32.totalorder %s1390_s19, %s1386_s18  ;;  %p1860_p6 = scmp.eq.s32.totalorder %s1576_s6, 0 }
  0x38   : > { %s95_s7 = sadd.s32 1, %s1382_s17  ;;  %p102_p1 = scmp.ne.s32.totalorder %s1382_s17, %s1378_s16 }
  0x39   : > { %s1585_s27 = scalar_select %p93_p5, %s1382_s17, %s95_s7  }
  0x3a   : > { %p1589_p11 = por %p1860_p6, %p80_p2  ;;  %p108_p3 = scmp.ne.s32.totalorder %s1378_s16, %s1374_s15 }
  0x3b   : > { %1877 = sst [smem:[#allocation21_spill]] %s1585_s27  ;;  %p771_p4 = scmp.ge.s32.totalorder %s1406_s23, 1 }
  0x3c   : > { %s1878_s28 = scalar_select %p1589_p11, 1, 0 }
  0x3d   : > { %p1879_p8 = scmp.eq.s32.totalorder %s1406_s23, 0  ;;  %p171_p12 = scmp.lt.s32.totalorder %s1406_s23, 3 }
  0x3e   : > { %p1603_p13 = por %p108_p3, %p1860_p6  ;;  %s1412_s12 = smov [#allocation3]  }
  0x3f   : > { %p104_p10 = por %p102_p1, %p1879_p8  ;;  %p1607_p0 = pnand %p771_p4, %p171_p12 }
  0x40   : > { %s1880_s18 = scalar_select %p1603_p13, 1, 0 }
  0x41   : > { %s1881_s30 = scalar_select %p1607_p0, 1, 0 }
  0x42   : > { %s186_s14 = sshll.u32 %s1412_s12, 4  ;;  %p1882_p5 = scmp.lt.s32.totalorder %s1406_s23, 2  ;;  %s187_s14 = int_to_ptr.vmem [resolvable:$true] %s186_s14 }
  0x43   : > { %p1064_p1 = pneg %p1607_p0  ;;  %s222_s15 = sand.u32 1, %s1382_s17  }
  0x44   : > { %p1613_p2 = pnand %p1882_p5, %p104_p10  ;;  %s776_s26 = sshll.u32 %s222_s15, 7 }
  0x45   : > { %p1622_p3 = pnand %p1064_p1, %p1860_p6  ;;  %s224_s9 = scalar_lea.vmem [#allocation8], %s776_s26 }
  0x46   : > { %s1883_s7 = scalar_select %p1613_p2, 1, 0 }
  0x47   : > { %s231_s1 = sshll.u32 %s224_s9, 4  ;;  %s1201_s5 = scalar_lea.hbm %s1843_s0, 256  ;;  %s1645_s1 = int_to_ptr.vmem [resolvable:$true] %s231_s1 }
  0x48   : > { %p1202_p4 = scmp.ne.s32.totalorder %s1843_s0, %s1201_s5  ;;  %p1203_p8 = pneg %p1622_p3 }
  0x49   : > { %p1208_p5 = scmp.lt.u32.totalorder %s1201_s5, %s1843_s0 }
  0x4a   : > { %p1204_p10 = pnand %p1203_p8, %p1202_p4 }
  0x4c   : > { %p1205_p12 = pneg %p1204_p10 }
  0x4e   : > { %p1210_p1 = pnand %p1208_p5, %p1205_p12 }
  0x50   : > { %1213 = shalt.err (!%p1210_p1)
}
  0x51   : > { %s1214_s26 = scalar_lea.vmem %s187_s14, 256  ;;  %p1222_p11 = scmp.lt.s32.totalorder %s187_s14, %s187_s14 }
  0x52   : > { %p1215_p6 = scmp.ne.s32.totalorder %s187_s14, %s1214_s26  ;;  %p1223_p0 = scmp.lt.s32.totalorder %s1214_s26, %s1214_s26 }
  0x54   : > { %p1217_p9 = pnand %p1215_p6, %p1203_p8  ;;  %p1224_p7 = por %p1223_p0, %p1222_p11 }
  0x56   : > { %p1218_p13 = pneg %p1217_p9 }
  0x58   : > { %p1225_p2 = pnand %p1224_p7, %p1218_p13 }
  0x5a   : > { %1228 = shalt.err (!%p1225_p2)
}
  0x5b   : > { %s1885_s23 = smov 8   ;;  %s1886_s24 = smov 128  }
  0x5c   : > { %1067 = dma.hbm_to_vmem [thread:$0]  (!%p1622_p3), %s1843_s0, 256, %s187_s14, [#allocation4], %s1886_s24, %s1886_s24, %s1885_s23  }
  0x5d   : > { %s1259_s4 = scalar_lea.hbm %s1539_s29, 2304  ;;  %p1887_p9 = scmp.ne.s32.totalorder %s1883_s7, 0 }
  0x5e   : > { %p1230_p7 = scmp.ne.s32.totalorder %s1542_s10, %s1259_s4  ;;  %s1234_s13 = scalar_lea.hbm %s1845_s2, 8192 }
  0x5f   : > { %p1231_p6 = pneg %p1887_p9  ;;  %p1235_p0 = scmp.lt.u32.totalorder %s1542_s10, %s1845_s2 }
  0x60   : > { %p1236_p2 = scmp.lt.u32.totalorder %s1234_s13, %s1259_s4  ;;  %p1238_p4 = scmp.lt.u32.totalorder %s1259_s4, %s1542_s10 }
  0x61   : > { %p1232_p11 = pnand %p1231_p6, %p1230_p7 }
  0x62   : > { %p1237_p3 = por %p1236_p2, %p1235_p0 }
  0x63   : > { %p1233_p13 = pneg %p1232_p11 }
  0x64   : > { %p1239_p8 = por %p1238_p4, %p1237_p3 }
  0x66   : > { %p1240_p10 = pnand %p1239_p8, %p1233_p13 }
  0x68   : > { %1243 = shalt.err (!%p1240_p10)
}
  0x69   : > { %s1244_s29 = scalar_lea.vmem %s1645_s1, 2048  ;;  %s1413_s14 = smov [#allocation8]  }
  0x6a   : > { %p1245_p12 = scmp.ne.s32.totalorder %s1645_s1, %s1244_s29  ;;  %s1249_s26 = sshll.u32 %s1413_s14, 4  ;;  %s1250_s26 = int_to_ptr.vmem [resolvable:$false] %s1249_s26 }
  0x6b   : > { %s1251_s9 = scalar_lea.vmem %s1250_s26, 4096  ;;  %p1252_p7 = scmp.lt.s32.totalorder %s1645_s1, %s1250_s26 }
  0x6c   : > { %p1247_p5 = pnand %p1245_p12, %p1231_p6  ;;  %p1253_p11 = scmp.lt.s32.totalorder %s1251_s9, %s1244_s29 }
  0x6e   : > { %p1248_p1 = pneg %p1247_p5  ;;  %p1254_p0 = por %p1253_p11, %p1252_p7 }
  0x70   : > { %p1255_p2 = pnand %p1254_p0, %p1248_p1 }
  0x72   : > { %1258 = shalt.err (!%p1255_p2)
}
  0x73   : > { %s1888_s27 = smov 512   ;;  %s794_s4 = sshll.u32 %s1402_s22, 11 }
  0x74   : > { %1074 = dma.hbm_to_vmem [thread:$0]  (!%p1887_p9), %s1542_s10, 2048, %s1645_s1, %s1544_s11, %s1888_s27, %s1886_s24, %s1885_s23  }
  0x75   : > { %s245_s17 = scalar_lea.vmem [#allocation9], %s1517_s8  ;;  %s1681_s12 = scalar_lea.hbm %s1846_s3, %s794_s4 }
  0x76   : > { %s252_s5 = sshll.u32 %s245_s17, 4  ;;  %s1889_s7 = sand.u32 1, %s1394_s20   ;;  %s1683_s5 = int_to_ptr.vmem [resolvable:$true] %s252_s5 }
  0x77   : > { %s1687_s29 = scalar_lea.sflag [#allocation10], %s1889_s7  ;;  %s1260_s14 = scalar_lea.hbm %s1681_s12, 2048 }
  0x78   : > { %p1261_p6 = scmp.ne.s32.totalorder %s1681_s12, %s1260_s14  ;;  %p1890_p9 = scmp.ne.s32.totalorder %s1876_s25, 0 }
  0x79   : > { %s1265_s10 = scalar_lea.hbm %s1846_s3, 4096  ;;  %p1266_p8 = scmp.lt.u32.totalorder %s1681_s12, %s1846_s3 }
  0x7a   : > { %p1891_p13 = pneg %p1890_p9  ;;  %p1267_p10 = scmp.lt.u32.totalorder %s1265_s10, %s1260_s14 }
  0x7b   : > { %p1269_p5 = scmp.lt.u32.totalorder %s1260_s14, %s1681_s12 }
  0x7c   : > { %p1263_p3 = pnand %p1261_p6, %p1891_p13  ;;  %p1268_p12 = por %p1267_p10, %p1266_p8 }
  0x7e   : > { %p1264_p4 = pneg %p1263_p3  ;;  %p1270_p1 = por %p1269_p5, %p1268_p12 }
  0x80   : > { %p1271_p7 = pnand %p1270_p1, %p1264_p4 }
  0x82   : > { %1274 = shalt.err (!%p1271_p7)
}
  0x83   : > { %s1275_s9 = scalar_lea.vmem %s1683_s5, 2048  ;;  %p1892_p0 = pmov %p1891_p13 }
  0x84   : > { %p1276_p11 = scmp.ne.s32.totalorder %s1683_s5, %s1275_s9  ;;  %s1414_s27 = smov [#allocation9]  }
  0x85   : > { %s1280_s4 = sshll.u32 %s1414_s27, 4  ;;  %s1281_s4 = int_to_ptr.vmem [resolvable:$false] %s1280_s4 }
  0x86   : > { %p1278_p2 = pnand %p1276_p11, %p1892_p0  ;;  %s1282_s17 = scalar_lea.vmem %s1281_s4, 4096 }
  0x87   : > { %p1283_p13 = scmp.lt.s32.totalorder %s1683_s5, %s1281_s4  ;;  %p1284_p3 = scmp.lt.s32.totalorder %s1282_s17, %s1275_s9 }
  0x88   : > { %p1279_p6 = pneg %p1278_p2 }
  0x89   : > { %p1285_p8 = por %p1284_p3, %p1283_p13 }
  0x8b   : > { %p1286_p10 = pnand %p1285_p8, %p1279_p6 }
  0x8d   : > { %1289 = shalt.err (!%p1286_p10)
}
  0x8e   : > { %1077 = dma.hbm_to_vmem [thread:$0]  (!%p1890_p9), %s1681_s12, 2048, %s1683_s5, %s1687_s29, %s1886_s24, %s1886_s24, %s1885_s23  }
  0x8f   : > { %p1893_p4 = scmp.ne.s32.totalorder %s1881_s30, 0 }
  0x90   : > { %p1894_p12 = scmp.eq.s32.totalorder (!%p1893_p4), %s1576_s6, 0 }
  0x91   : > { %264 = sbr.rel (%p1893_p4) target bundleno = 702 (0x2be), region = 36 }
  0x98   : > { %1353 = dma.done.wait (%p1894_p12), [#allocation4], 256   ;;  %p1895_p5 = pmov %p1894_p12 }
  0x99   : > { %s270_s25 = sand.u32 1, %s1576_s6   ;;  %s272_s13 = sand.u32 1, %s1390_s19  }
  0x9a   : > { %1355 = vsyncadd (%p1895_p5), [#allocation4], 4294967040  ;;  %s783_s15 = sshll.u32 %s272_s13, 7  ;;  %s271_s7 = scalar_lea.sflag [#allocation7], %s270_s25 }
  0x9b   : > { %s1724_s14 = scalar_lea.vmem [#allocation6], %s783_s15  ;;  %p1896_p1 = scmp.ne.s32.totalorder %s1878_s28, 0 }
  0x9d   : > { %1357 = dma.done.wait (%p1896_p1), %s271_s7, 2048  }
  0x9e   : > { %1359 = vsyncadd (%p1896_p1), %s271_s7, 4294965248  ;;  %s281_s30 = sand.u32 1, %s1378_s16   ;;  %p1897_p9 = scmp.ne.s32.totalorder %s1880_s18, 0 }
  0x9f   : > { %s784_s23 = sshll.u32 %s281_s30, 7 }
  0xa0   : > { %s1731_s24 = scalar_lea.vmem [#allocation8], %s784_s23 }
  0xa1   : > { %1361 = dma.done.wait (%p1897_p9), %s271_s7, 2048  }
  0xa2   : > { %1363 = vsyncadd (%p1897_p9), %s271_s7, 4294965248  ;;  %s289_s5 = scalar_lea.sflag [#allocation10], %s272_s13  ;;  %s1737_s12 = scalar_lea.vmem [#allocation9], %s783_s15 }
  0xa3   : > { %1365 = dma.done.wait (%p1896_p1), %s289_s5, 2048  }
  0xa4   : > { %1367 = vsyncadd (%p1896_p1), %s289_s5, 4294965248  ;;  %v328_v0 = vld [vmem:[%s1724_s14] sm:$0xff]  ;;  %v329_v1 = vld [vmem:[%s1724_s14 + $0x8] sm:$0xff]  ;;  %p788_p7 = scmp.ne.s32.totalorder %s1398_s21, 0 }
  0xa5   : > { %v330_v2 = vld [vmem:[%s1724_s14 + $0x10] sm:$0xff]  ;;  %v954_v3 = vpack.c.bf16 %v329_v1, %v328_v0  ;;  %v331_v4 = vld [vmem:[%s1724_s14 + $0x18] sm:$0xff]  ;;  %v332_v6 = vld [vmem:[%s1724_s14 + $0x20] sm:$0xff] }
  0xa6   : > { %v958_v5 = vpack.c.bf16 %v331_v4, %v330_v2  ;;  %v333_v7 = vld [vmem:[%s1724_s14 + $0x28] sm:$0xff]  ;;  %v419_v8 = vld [vmem:[%s1731_s24] sm:$0xff]  ;;  %v334_v10 = vld [vmem:[%s1724_s14 + $0x30] sm:$0xff] }
  0xa7   : > { %955 = vmatprep.subr.bf16.mxu0 %v954_v3  ;;  %v962_v9 = vpack.c.bf16 %v333_v7, %v332_v6  ;;  %v335_v11 = vld [vmem:[%s1724_s14 + $0x38] sm:$0xff]  ;;  %v420_v12 = vld [vmem:[%s1731_s24 + $0x8] sm:$0xff]  ;;  %v326_v14 = vld [vmem:[#allocation3] sm:$0xff] }
  0xa8   : > { %957 = vmatpush3.bf16.msra.mxu0 %v954_v3  ;;  %v986_v13 = vpack.c.bf16 %v420_v12, %v419_v8  ;;  %v421_v15 = vld [vmem:[%s1731_s24 + $0x10] sm:$0xff]  ;;  %v422_v16 = vld [vmem:[%s1731_s24 + $0x18] sm:$0xff]  ;;  %881 = vmatprep.mubr.f32.mxu0 %v326_v14  ;;  %v423_v18 = vld [vmem:[%s1731_s24 + $0x20] sm:$0xff]  ;;  %v966_v20 = vpack.c.bf16 %v335_v11, %v334_v10 }
  0xa9   : > { %959 = vmatprep.subr.bf16.mxu0 %v958_v5  ;;  %v990_v17 = vpack.c.bf16 %v422_v16, %v421_v15  ;;  %v424_v19 = vld [vmem:[%s1731_s24 + $0x28] sm:$0xff]  ;;  %916 = vmatprep.mubr.f32.mxu1 %v326_v14  ;;  %v336_v21 = vld [vmem:[%s1724_s14 + $0x40] sm:$0xff]  ;;  %v425_v24 = vld [vmem:[%s1731_s24 + $0x30] sm:$0xff] }
  0xaa   : > { %987 = vmatprep.subr.bf16.mxu1 %v986_v13  ;;  %v337_v22 = vld [vmem:[%s1724_s14 + $0x48] sm:$0xff]  ;;  %v994_v23 = vpack.c.bf16 %v424_v19, %v423_v18  ;;  %v426_v25 = vld [vmem:[%s1731_s24 + $0x38] sm:$0xff]  ;;  %v338_v27 = vld [vmem:[%s1724_s14 + $0x50] sm:$0xff] }
  0xab   : > { %989 = vmatpush3.bf16.msra.mxu1 %v986_v13  ;;  %v970_v26 = vpack.c.bf16 %v337_v22, %v336_v21  ;;  %v339_v28 = vld [vmem:[%s1724_s14 + $0x58] sm:$0xff]  ;;  %v998_v29 = vpack.c.bf16 %v426_v25, %v425_v24  ;;  %v427_v30 = vld [vmem:[%s1731_s24 + $0x40] sm:$0xff]  ;;  %v428_v31 = vld [vmem:[%s1731_s24 + $0x48] sm:$0xff] }
  0xac   : > { %961 = vmatpush3.bf16.msra.mxu0 %v958_v5  ;;  %991 = vmatprep.subr.bf16.mxu1 %v990_v17  ;;  %v974_v32 = vpack.c.bf16 %v339_v28, %v338_v27  ;;  %v340_v33 = vld [vmem:[%s1724_s14 + $0x60] sm:$0xff]  ;;  %v341_v34 = vld [vmem:[%s1724_s14 + $0x68] sm:$0xff]  ;;  %v1002_v35 = vpack.c.bf16 %v428_v31, %v427_v30  ;;  %v429_v36 = vld [vmem:[%s1731_s24 + $0x50] sm:$0xff]  ;;  %v1415_v28 = vmov (!%p788_p7), 0.0  }
  0xad   : > { %963 = vmatprep.subr.bf16.mxu0 %v962_v9  ;;  %v430_v37 = vld [vmem:[%s1731_s24 + $0x58] sm:$0xff]  ;;  %v978_v38 = vpack.c.bf16 %v341_v34, %v340_v33  ;;  %v342_v39 = vld [vmem:[%s1724_s14 + $0x70] sm:$0xff]  ;;  %v431_v42 = vld [vmem:[%s1731_s24 + $0x60] sm:$0xff]  ;;  %621 = vst [vmem:[#allocation2] sm:$0xff] (!%p788_p7), %v1415_v28 }
  0xae   : > { %v343_v40 = vld [vmem:[%s1724_s14 + $0x78] sm:$0xff]  ;;  %v1006_v41 = vpack.c.bf16 %v430_v37, %v429_v36  ;;  %v432_v43 = vld [vmem:[%s1731_s24 + $0x68] sm:$0xff]  ;;  %v433_v46 = vld [vmem:[%s1731_s24 + $0x70] sm:$0xff]  ;;  %622 = vst [vmem:[#allocation2 + $0x8] sm:$0xff] (!%p788_p7), %v1415_v28 }
  0xaf   : > { %993 = vmatpush3.bf16.msra.mxu1 %v990_v17  ;;  %v982_v44 = vpack.c.bf16 %v343_v40, %v342_v39  ;;  %v1010_v45 = vpack.c.bf16 %v432_v43, %v431_v42  ;;  %v434_v47 = vld [vmem:[%s1731_s24 + $0x78] sm:$0xff]  ;;  %v526_v50 = vld [vmem:[%s1737_s12] sm:$0xff]  ;;  %v527_v51 = vld [vmem:[%s1737_s12 + $0x8] sm:$0xff] }
  0xb0   : > { %965 = vmatpush3.bf16.msra.mxu0 %v962_v9  ;;  %995 = vmatprep.subr.bf16.mxu1 %v994_v23  ;;  %v1014_v48 = vpack.c.bf16 %v434_v47, %v433_v46  ;;  %v327_v49 = vld [vmem:[#allocation3 + $0x8] sm:$0xff]  ;;  %v1018_v52 = vpack.c.bf16 %v527_v51, %v526_v50  ;;  %v528_v53 = vld [vmem:[%s1737_s12 + $0x10] sm:$0xff]  ;;  %v530_v56 = vld [vmem:[%s1737_s12 + $0x20] sm:$0xff] }
  0xb1   : > { %967 = vmatprep.subr.bf16.mxu0 %v966_v20  ;;  %v529_v54 = vld [vmem:[%s1737_s12 + $0x18] sm:$0xff]  ;;  %v531_v57 = vld [vmem:[%s1737_s12 + $0x28] sm:$0xff]  ;;  %v532_v59 = vld [vmem:[%s1737_s12 + $0x30] sm:$0xff] }
  0xb2   : > { %v1022_v55 = vpack.c.bf16 %v529_v54, %v528_v53  ;;  %v1026_v58 = vpack.c.bf16 %v531_v57, %v530_v56  ;;  %v533_v60 = vld [vmem:[%s1737_s12 + $0x38] sm:$0xff]  ;;  %v534_v62 = vld [vmem:[%s1737_s12 + $0x40] sm:$0xff]  ;;  %v535_v63 = vld [vmem:[%s1737_s12 + $0x48] sm:$0xff] }
  0xb3   : > { %997 = vmatpush3.bf16.msra.mxu1 %v994_v23  ;;  %v1030_v61 = vpack.c.bf16 %v533_v60, %v532_v59  ;;  %v1034_v0 = vpack.c.bf16 %v535_v63, %v534_v62  ;;  %v536_v1 = vld [vmem:[%s1737_s12 + $0x50] sm:$0xff]  ;;  %v537_v2 = vld [vmem:[%s1737_s12 + $0x58] sm:$0xff]  ;;  %v538_v4 = vld [vmem:[%s1737_s12 + $0x60] sm:$0xff] }
  0xb4   : > { %969 = vmatpush3.bf16.msra.mxu0 %v966_v20  ;;  %999 = vmatprep.subr.bf16.mxu1 %v998_v29  ;;  %v1038_v3 = vpack.c.bf16 %v537_v2, %v536_v1  ;;  %v539_v5 = vld [vmem:[%s1737_s12 + $0x68] sm:$0xff]  ;;  %v540_v7 = vld [vmem:[%s1737_s12 + $0x70] sm:$0xff]  ;;  %v541_v8 = vld [vmem:[%s1737_s12 + $0x78] sm:$0xff] }
  0xb5   : > { %971 = vmatprep.subr.bf16.mxu0 %v970_v26  ;;  %v1042_v6 = vpack.c.bf16 %v539_v5, %v538_v4  ;;  %v1046_v9 = vpack.c.bf16 %v541_v8, %v540_v7 }
  0xb7   : > { %1001 = vmatpush3.bf16.msra.mxu1 %v998_v29 }
  0xb8   : > { %973 = vmatpush3.bf16.msra.mxu0 %v970_v26  ;;  %1003 = vmatprep.subr.bf16.mxu1 %v1002_v35 }
  0xb9   : > { %975 = vmatprep.subr.bf16.mxu0 %v974_v32 }
  0xbb   : > { %1005 = vmatpush3.bf16.msra.mxu1 %v1002_v35 }
  0xbc   : > { %977 = vmatpush3.bf16.msra.mxu0 %v974_v32  ;;  %1007 = vmatprep.subr.bf16.mxu1 %v1006_v41 }
  0xbd   : > { %979 = vmatprep.subr.bf16.mxu0 %v978_v38 }
  0xbf   : > { %1009 = vmatpush3.bf16.msra.mxu1 %v1006_v41 }
  0xc0   : > { %981 = vmatpush3.bf16.msra.mxu0 %v978_v38  ;;  %1011 = vmatprep.subr.bf16.mxu1 %v1010_v45 }
  0xc1   : > { %983 = vmatprep.subr.bf16.mxu0 %v982_v44 }
  0xc3   : > { %1013 = vmatpush3.bf16.msra.mxu1 %v1010_v45 }
  0xc4   : > { %985 = vmatpush3.bf16.msra.mxu0 %v982_v44  ;;  %1015 = vmatprep.subr.bf16.mxu1 %v1014_v48 }
  0xc5   : > { %1019 = vmatprep.subr.bf16.mxu0 %v1018_v52 }
  0xc7   : > { %882 = vmatmul.mubr.f32.vlgmr.msra.gmra.mrb[0].mxu0 %v327_v49  ;;  %1017 = vmatpush3.bf16.msra.mxu1 %v1014_v48 }
  0xc8   : > { %1021 = vmatpush3.bf16.msra.mxu0 %v1018_v52 }
  0xc9   : > { %1023 = vmatprep.subr.bf16.mxu0 %v1022_v55 }
  0xca   : > { %917 = vmatmul.mubr.f32.vlgmr.msra.gmra.mrb[0].mxu1 %v327_v49 }
  0xcc   : > { %1025 = vmatpush3.bf16.msra.mxu0 %v1022_v55 }
  0xcd   : > { %1027 = vmatprep.subr.bf16.mxu0 %v1026_v58 }
  0xd0   : > { %1029 = vmatpush3.bf16.msra.mxu0 %v1026_v58 }
  0xd1   : > { %1031 = vmatprep.subr.bf16.mxu0 %v1030_v61 }
  0xd4   : > { %1033 = vmatpush3.bf16.msra.mxu0 %v1030_v61 }
  0xd5   : > { %1035 = vmatprep.subr.bf16.mxu0 %v1034_v0 }
  0xd8   : > { %1037 = vmatpush3.bf16.msra.mxu0 %v1034_v0 }
  0xd9   : > { %1039 = vmatprep.subr.bf16.mxu0 %v1038_v3 }
  0xdc   : > { %1041 = vmatpush3.bf16.msra.mxu0 %v1038_v3 }
  0xdd   : > { %1043 = vmatprep.subr.bf16.mxu0 %v1042_v6 }
  0xe0   : > { %1045 = vmatpush3.bf16.msra.mxu0 %v1042_v6 }
  0xe1   : > { %1047 = vmatprep.subr.bf16.mxu0 %v1046_v9 }
  0xe4   : > { %1049 = vmatpush3.bf16.msra.mxu0 %v1046_v9 }
 0x19a   : > { %v883_v10 = vpop.f32.mrb[0].mxu0 }
 0x19b   : > { %v787_v11 = vmul.f32 -1.442695, %v883_v10  ;;  %v410_v12 = vpop.f32.mrb[1].mxu0 }
 0x19c   : > { %v786_v13 = vmul.f32 -1.442695, %v410_v12 }
 0x19d   : > { %1163 = vpow2.f32 %v787_v11  ;;  %v918_v14 = vpop.f32.mrb[0].mxu1 }
 0x19e   : > { %1165 = vpow2.f32 %v786_v13  ;;  %v501_v15 = vpop.f32.mrb[1].mxu1 }
 0x1a7   : > { %v1164_v16 = vpop.eup %1163 }
 0x1a8   : > { %v1166_v17 = vpop.eup %1165  ;;  %v517_v18 = vadd.f32 1.0, %v1164_v16 }
 0x1a9   : > { %v516_v19 = vadd.f32 1.0, %v1166_v17 }
 0x1aa   : > { %1167 = vrcp.f32 %v517_v18 }
 0x1ab   : > { %1169 = vrcp.f32 %v516_v19 }
 0x1b4   : > { %v1168_v20 = vpop.eup %1167 }
 0x1b5   : > { %v1170_v21 = vpop.eup %1169  ;;  %v523_v22 = vmul.f32 %v1168_v20, %v883_v10 }
 0x1b6   : > { %v522_v23 = vmul.f32 %v1170_v21, %v410_v12 }
 0x1b7   : > { %v525_v24 = vmul.f32 %v918_v14, %v523_v22 }
 0x1b8   : > { %v524_v25 = vmul.f32 %v522_v23, %v501_v15 }
 0x1ba   : > { %951 = vmatprep.mubr.f32.mxu0 %v524_v25 }
 0x1bb   : > { %952 = vmatmul.mubr.f32.vlgmr.msra.gmra.mrb[2].mxu0 %v525_v24 }
 0x289   : > { %620 = sbr.rel (%p788_p7) target bundleno = 656 (0x290), region = 56 }
 0x28e   : > { %v953_v26 = vpop.f32.mrb[2].mxu0 }
 0x28f   : > { %v608_v27 = vpop.f32.mrb[3].mxu0 }
 0x290 PF: > { %v623_v29 = vld [vmem:[#allocation2] sm:$0xff]  ;;  %v624_v30 = vld [vmem:[#allocation2 + $0x8] sm:$0xff]  ;;  %p789_p11 = scmp.ne.s32.totalorder %s1398_s21, 1 }
 0x291   : > { %v625_v31 = vadd.f32 %v623_v29, %v608_v27  ;;  %v626_v32 = vadd.f32 %v953_v26, %v624_v30 }
 0x292   : > { %632 = sbr.rel (%p789_p11) target bundleno = 670 (0x29e), region = 60 }
 0x293   : > { %627 = vst [vmem:[#allocation2] sm:$0xff] %v625_v31  ;;  %628 = vst [vmem:[#allocation2 + $0x8] sm:$0xff] %v626_v32 }
 0x29a   : > { %v633_v33 = vld [vmem:[#allocation2] sm:$0xff]  ;;  %v634_v34 = vld [vmem:[#allocation2 + $0x8] sm:$0xff] }
 0x29b   : > { %v635_v35 = vmul.f32 0.5, %v633_v33  ;;  %v636_v36 = vmul.f32 0.5, %v634_v34 }
 0x29d   : > { %637 = vst [vmem:[#allocation11] sm:$0xff] %v635_v35  ;;  %638 = vst [vmem:[#allocation11 + $0x8] sm:$0xff] %v636_v36 }
 0x29e PF: > { %p1081_p0 = scmp.eq.s32.totalorder %s1576_s6, 1  ;;  %s1416_s28 = smov [#allocation11]  }
 0x29f   : > { %s648_s18 = sshll.u32 %s1416_s28, 4  ;;  %s649_s18 = int_to_ptr.vmem [resolvable:$true] %s648_s18 }
 0x2a0   : > { %s1290_s29 = scalar_lea.vmem %s649_s18, 256  ;;  %p1297_p3 = scmp.lt.s32.totalorder %s649_s18, %s649_s18 }
 0x2a1   : > { %p1291_p2 = scmp.ne.s32.totalorder %s649_s18, %s1290_s29  ;;  %p1298_p8 = scmp.lt.s32.totalorder %s1290_s29, %s1290_s29 }
 0x2a3   : > { %p1292_p6 = pnand %p1291_p2, %p1081_p0  ;;  %p1299_p10 = por %p1298_p8, %p1297_p3 }
 0x2a5   : > { %p1293_p13 = pneg %p1292_p6 }
 0x2a7   : > { %p1300_p4 = pnand %p1299_p10, %p1293_p13 }
 0x2a9   : > { %1303 = shalt.err (!%p1300_p4)
}
 0x2aa   : > { %s1898_s8 = sld [smem:[#allocation23_spill]] }
 0x2b0   : > { %s1304_s10 = scalar_lea.hbm %s1898_s8, 256 }
 0x2b1   : > { %p1305_p12 = scmp.ne.s32.totalorder %s1898_s8, %s1304_s10  ;;  %p1310_p9 = scmp.lt.u32.totalorder %s1304_s10, %s1898_s8 }
 0x2b3   : > { %p1306_p5 = pnand %p1305_p12, %p1081_p0 }
 0x2b5   : > { %p1307_p1 = pneg %p1306_p5 }
 0x2b7   : > { %p1312_p7 = pnand %p1310_p9, %p1307_p1 }
 0x2b9   : > { %1315 = shalt.err (!%p1312_p7)
}
 0x2ba   : > { %s1417_s4 = smov 128   ;;  %s1418_s17 = smov 8  }
 0x2bb   : > { %1061 = dma.vmem_to_hbm [thread:$0]  (%p1081_p0), %s649_s18, 256, %s1898_s8, [#allocation5], %s1417_s4, %s1417_s4, %s1418_s17  }
 0x2bc   : > { %1369 = dma.done.wait (%p1081_p0), [#allocation5], 256  }
 0x2bd   : > { %1371 = vsyncadd (%p1081_p0), [#allocation5], 4294967040 }
 0x2be PF: > { %s1899_s15 = sld [smem:[#allocation18_spill]]  ;;  %s1900_s7 = sld [smem:[#allocation17_spill]] }
 0x2bf   : > { %s1901_s17 = sld [smem:[#allocation21_spill]]  ;;  %s1902_s14 = sld [smem:[#allocation20_spill]] }
 0x2c0   : > { %s1903_s30 = sld [smem:[#allocation19_spill]]  ;;  %s1906_s18 = smov %s1390_s19 }
 0x2c1   : > { %s1907_s19 = smov %s1394_s20  ;;  %s1909_s21 = smov %s1402_s22 }
 0x2c4   : > { %s22_s23 = sadd.s32 1, %s1899_s15   ;;  %s1904_s15 = smov %s1378_s16 }
 0x2c5   : > { %p19_p11 = scmp.ge.s32.totalorder %s22_s23, 4   ;;  %s1905_s16 = smov %s1900_s7 }
 0x2c6   : > { %s1908_s20 = smov %s1902_s14  ;;  %s1910_s22 = smov %s1903_s30 }
 0x2c7   :  { %21 = sbr.rel (!%p19_p11) target bundleno = 13 (0xd), region = 112 }
 0x2ce   :  { %664 = vsyncpa [#allocation4], 1 }
 0x2cf   :  { %666 = vsyncpa [#allocation4 + $0x1], 1 }
 0x2d0   :  { %667 = vsyncpa [#allocation7], 1 }
 0x2d1   :  { %669 = vsyncpa [#allocation7 + $0x1], 1 }
 0x2d2   :  { %670 = vsyncpa [#allocation10], 1 }
 0x2d3   :  { %672 = vsyncpa [#allocation10 + $0x1], 1 }
 0x2d4   :  { %673 = vsyncpa [#allocation5], 1 }
 0x2d5   :  { %675 = vsyncpa [#allocation5 + $0x1], 1 }

</bundles_post_ra>
